<compile_context>
chip_gen: v5e
topology: v5e:2x2
jax: 0.10.0
libtpu: 0.0.40
codegen_flags: <defaults>
</compile_context>

<pallas_src>
import functools

import jax
import jax.numpy as jnp
from jax.experimental import pallas as pl
from jax.experimental.pallas import tpu as pltpu

BN_EPS = 1e-5


# ---------------------------------------------------------------------------
# Pallas kernel
# ---------------------------------------------------------------------------

def _conv_bn_act_kernel(x_ref, w_ref, t_ref, o_ref, *, act):
    # x_ref: (Cin, TL) f32   -- one batch element, one L tile (lane axis)
    # w_ref: (Cout, Cin) bf16 -- BN scale already folded into the columns
    # t_ref: (Cout, 1)  f32   -- folded bias/shift, broadcast over lanes
    # o_ref: (Cout, TL) f32
    x = x_ref[...].astype(jnp.bfloat16)                       # VPU repack, cheap
    y = jnp.dot(w_ref[...], x, preferred_element_type=jnp.float32)
    y = y + t_ref[...]                                        # lane-broadcast add
    if act == "relu":
        y = jnp.maximum(y, 0.0)
    o_ref[...] = y.astype(o_ref.dtype)


# ---------------------------------------------------------------------------
# Wrapper
# ---------------------------------------------------------------------------

def _round_up(x, m):
    return (x + m - 1) // m * m


def _pick_tl(batch, lp, min_steps=8, max_tl=2048):
    """Largest lane tile (multiple of 128 dividing lp) that still leaves
    >= min_steps grid steps (so each v7x core gets a few pipelined steps).
    Falls back to 128 (max pipelining) when L is too small."""
    best = 128
    tl = 128
    while tl <= min(lp, max_tl):
        if lp % tl == 0 and batch * (lp // tl) >= min_steps:
            best = tl
        tl += 128
    return best


def conv_bn_relu_1d(x_bcl, params, act="relu"):
    """Forward of ConvBNReLU1D.  x_bcl: [B, Cin, L] (PyTorch NCL layout)."""
    # TODO(synk): only kernel_size=1 (the module's default) is supported; a
    # k>1 Conv1d would require an im2col gather which is out of scope here.
    B, Cin, L = x_bcl.shape
    w = params["w"]                                    # [Cin, Cout]
    Cout = w.shape[1]

    # Fold Conv1d bias + BatchNorm1d (running stats / eval mode):
    #   scale = gamma / sqrt(var + eps);  shift = (b - mean) * scale + beta
    # Scale folded into the weight columns in f32, then cast to bf16 (MXU).
    scale = params["gamma"] / jnp.sqrt(params["var"] + BN_EPS)          # [Cout]
    shift = (params["b"] - params["mean"]) * scale + params["beta"]     # [Cout]
    w_t = (w.astype(jnp.float32) * scale[None, :]).T.astype(jnp.bfloat16)  # [Cout, Cin]
    shift_col = shift.astype(jnp.float32).reshape(Cout, 1)              # [Cout, 1]

    # Keep NCL layout; only the L (lane) axis is padded to a multiple of 128
    # when necessary -- channels are never padded.
    Lp = _round_up(L, 128)
    x_p = x_bcl.astype(jnp.float32)
    if Lp != L:
        x_p = jnp.pad(x_p, ((0, 0), (0, 0), (0, Lp - L)))

    TL = _pick_tl(B, Lp)
    n_l = Lp // TL
    grid = (B, n_l)

    # Per-step VMEM footprint: double-buffered x/out tiles + resident params.
    fp = (2 * Cin * TL * 4          # x tiles, f32
          + 2 * Cout * TL * 4       # out tiles, f32
          + Cout * Cin * 2          # resident folded weights, bf16
          + Cout * 4)               # shift
    vmem_limit = int(min(max(4 * fp, 16 << 20), 48 << 20))   # stay far below v7x 64 MiB

    cost = pl.CostEstimate(
        flops=2 * B * Lp * Cin * Cout,
        transcendentals=0,
        bytes_accessed=B * Lp * Cin * 4 + Cout * Cin * 2 + Cout * 4 + B * Lp * Cout * 4,
    )

    out = pl.pallas_call(
        functools.partial(_conv_bn_act_kernel, act=act),
        out_shape=jax.ShapeDtypeStruct((B, Cout, Lp), jnp.float32),
        grid=grid,
        in_specs=[
            # batch dim squeezed (None); >=8 grid steps make the default
            # double-buffered pipeline sufficient to hide the tile DMAs.
            pl.BlockSpec((None, Cin, TL), lambda b, l: (b, 0, l)),
            pl.BlockSpec((Cout, Cin), lambda b, l: (0, 0)),
            pl.BlockSpec((Cout, 1), lambda b, l: (0, 0)),
        ],
        out_specs=pl.BlockSpec((None, Cout, TL), lambda b, l: (b, 0, l)),
        compiler_params=pltpu.CompilerParams(
            dimension_semantics=("parallel", "parallel"),
            vmem_limit_bytes=vmem_limit,
        ),
        cost_estimate=cost,
    )(x_p, w_t, shift_col)

    return out if Lp == L else out[:, :, :L]


# ---------------------------------------------------------------------------
# Pure-JAX reference + deterministic init
# ---------------------------------------------------------------------------

def _reference(x_bcl, params, act="relu"):
    scale = params["gamma"] / jnp.sqrt(params["var"] + BN_EPS)
    shift = (params["b"] - params["mean"]) * scale + params["beta"]
    y = jnp.einsum("bcl,cd->bdl", x_bcl, params["w"])
    y = y * scale[None, :, None] + shift[None, :, None]
    return jnp.maximum(y, 0.0) if act == "relu" else y


def init_params(key, cin, cout):
    kw, kb, km, kv = jax.random.split(key, 4)
    return dict(
        w=jax.random.normal(kw, (cin, cout), jnp.float32) / jnp.sqrt(float(cin)),
        b=jax.random.normal(kb, (cout,), jnp.float32) * 0.1,
        gamma=jnp.ones((cout,), jnp.float32),
        beta=jnp.zeros((cout,), jnp.float32),
        mean=jax.random.normal(km, (cout,), jnp.float32) * 0.05,
        var=jnp.ones((cout,), jnp.float32)
            + jax.random.uniform(kv, (cout,), jnp.float32) * 0.1,
    )


# ---------------------------------------------------------------------------

if __name__ == "__main__":
    key = jax.random.PRNGKey(0)
    k_params, k_input = jax.random.split(key)

    # Small shapes consistent with the module: batch=2, in=16, out=32, L=512
    # -> grid=(2, 4): 8 pipelined steps, 4 per v7x TensorCore.
    B, Cin, Cout, L = 2, 16, 32, 512
    params = init_params(k_params, Cin, Cout)
    x = jax.random.normal(k_input, (B, Cin, L), jnp.float32)

    y = jax.block_until_ready(conv_bn_relu_1d(x, params))
    assert y.shape == (B, Cout, L)
    assert bool(jnp.all(jnp.isfinite(y)))

    # Correctness vs. pure-JAX reference (loose tolerance for bf16 MXU inputs).
    y_ref = _reference(x, params)
    max_err = float(jnp.max(jnp.abs(y - y_ref)))
    assert bool(jnp.allclose(y, y_ref, atol=6e-2, rtol=6e-2)), max_err

    print("KERNEL_OK")
</pallas_src>

<mosaic_0001>
module attributes {stable_mosaic.version = 11 : i64} {
  func.func @_conv_bn_act_kernel(%arg0: i32, %arg1: i32, %arg2: memref<1x16x128xf32, #tpu.memory_space<vmem>>, %arg3: memref<32x16xbf16, #tpu.memory_space<vmem>>, %arg4: memref<32x1xf32, #tpu.memory_space<vmem>>, %arg5: memref<1x32x128xf32, #tpu.memory_space<vmem>>) attributes {dimension_semantics = [#tpu.dimension_semantics<parallel>, #tpu.dimension_semantics<parallel>], iteration_bounds = array<i64: 2, 4>, scalar_prefetch = 0 : i64, scratch_operands = 0 : i64, tpu.core_type = #tpu.core_type<tc>, window_params = [{transform_indices = @transform_0, window_bounds = array<i64: 1, 16, 128>}, {pipeline_mode = #tpu.pipeline_mode<synchronous>, transform_indices = @transform_1, window_bounds = array<i64: 32, 16>}, {pipeline_mode = #tpu.pipeline_mode<synchronous>, transform_indices = @transform_2, window_bounds = array<i64: 32, 1>}, {transform_indices = @transform_3, window_bounds = array<i64: 1, 32, 128>}]} {
    %c0 = arith.constant 0 : index
    %c0_0 = arith.constant 0 : index
    %c0_1 = arith.constant 0 : index
    %0 = vector.load %arg2[%c0, %c0_0, %c0_1] : memref<1x16x128xf32, #tpu.memory_space<vmem>>, vector<1x16x128xf32>
    %1 = vector.shape_cast %0 : vector<1x16x128xf32> to vector<16x128xf32>
    %2 = arith.truncf %1 : vector<16x128xf32> to vector<16x128xbf16>
    %c0_2 = arith.constant 0 : index
    %c0_3 = arith.constant 0 : index
    %3 = vector.load %arg3[%c0_2, %c0_3] : memref<32x16xbf16, #tpu.memory_space<vmem>>, vector<32x16xbf16>
    %cst = arith.constant dense<0.000000e+00> : vector<32x128xf32>
    %4 = tpu.matmul %3, %2, %cst {dimension_numbers = #tpu.dot_dimension_numbers<[1], [0], [0], [1], [0, 0, 1, 1], [], []>} : vector<32x16xbf16>, vector<16x128xbf16>, vector<32x128xf32> -> vector<32x128xf32>
    %c0_4 = arith.constant 0 : index
    %c0_5 = arith.constant 0 : index
    %5 = vector.load %arg4[%c0_4, %c0_5] : memref<32x1xf32, #tpu.memory_space<vmem>>, vector<32x1xf32>
    %6 = vector.broadcast %5 : vector<32x1xf32> to vector<32x128xf32>
    %7 = arith.addf %4, %6 : vector<32x128xf32>
    %cst_6 = arith.constant 0.000000e+00 : f32
    %8 = vector.broadcast %cst_6 : f32 to vector<32x128xf32>
    %9 = arith.maximumf %7, %8 : vector<32x128xf32>
    %c0_7 = arith.constant 0 : index
    %c0_8 = arith.constant 0 : index
    %c0_9 = arith.constant 0 : index
    %10 = vector.load %arg5[%c0_7, %c0_8, %c0_9] : memref<1x32x128xf32, #tpu.memory_space<vmem>>, vector<1x32x128xf32>
    %11 = vector.shape_cast %10 : vector<1x32x128xf32> to vector<32x128xf32>
    %12 = vector.shape_cast %9 : vector<32x128xf32> to vector<1x32x128xf32>
    tpu.vector_store %arg5[%c0_7, %c0_8, %c0_9], %12 {strides = array<i32>} : memref<1x32x128xf32, #tpu.memory_space<vmem>>, vector<1x32x128xf32>,
    return
  }
  func.func @transform_0(%arg0: i32, %arg1: i32) -> (i32, i32, i32) {
    %c0_i32 = arith.constant 0 : i32
    %c0_i32_0 = arith.constant 0 : i32
    return %arg0, %c0_i32, %arg1 : i32, i32, i32
  }
  func.func @transform_1(%arg0: i32, %arg1: i32) -> (i32, i32) {
    %c0_i32 = arith.constant 0 : i32
    %c0_i32_0 = arith.constant 0 : i32
    %c0_i32_1 = arith.constant 0 : i32
    return %c0_i32, %c0_i32_0 : i32, i32
  }
  func.func @transform_2(%arg0: i32, %arg1: i32) -> (i32, i32) {
    %c0_i32 = arith.constant 0 : i32
    %c0_i32_0 = arith.constant 0 : i32
    %c0_i32_1 = arith.constant 0 : i32
    return %c0_i32, %c0_i32_0 : i32, i32
  }
  func.func @transform_3(%arg0: i32, %arg1: i32) -> (i32, i32, i32) {
    %c0_i32 = arith.constant 0 : i32
    %c0_i32_0 = arith.constant 0 : i32
    return %arg0, %c0_i32, %arg1 : i32, i32, i32
  }
}

</mosaic_0001>

<bundles_post_ra>
// kernel: tpu_custom_call.1
= control target key start
LH: loop header
LB: loop body
LE: loop exit
PB: predicated region body
PF: predicated region fallthrough
CT: control target
= control target key end

     0   :  { %8 = vsyncpa [#allocation3], 0  ;;  %s822_s0 = inlined_call_operand.hbm [shape: f32[2,16,512], index: 0, kind: input, shape index: {}]   ;;  %s823_s1 = inlined_call_operand.vmem [shape: bf16[32,16], index: 1, kind: input, shape index: {}]   ;;  %s824_s2 = inlined_call_operand.vmem [shape: f32[32,1], index: 2, kind: input, shape index: {}]   ;;  %s825_s3 = inlined_call_operand.hbm [shape: f32[2,32,512], index: 3, kind: output, shape index: {}]  }
   0x1   :  { %10 = vsyncpa [#allocation3 + $0x1], 0 }
   0x2   :  { %11 = vsyncpa [#allocation4], 0 }
   0x3   :  { %13 = vsyncpa [#allocation4 + $0x1], 0  ;;  %s661_s12 = smov 0   ;;  %s663_s13 = smov 0  }
   0x4   :  { %s665_s14 = smov 0   ;;  %s667_s15 = smov 0  }
   0x5   :  { %s669_s16 = smov 0   ;;  %s671_s17 = smov 0  }
   0x6   :  { %s673_s18 = smov 0   ;;  %s675_s19 = smov 0  }
   0x7 LB: > { %s389_s20 = sadd.s32 4294967295, %s632_s19   ;;  %s390_s21 = sadd.s32 4294967294, %s632_s19   ;;  %s632_s19 = sphi %s675_s19, %s19_s19   ;;  %s628_s18 = sphi %s673_s18, %s844_s18   ;;  %s624_s17 = sphi %s671_s17, %s843_s17   ;;  %s620_s16 = sphi %s669_s16, %s842_s16   ;;  %s616_s15 = sphi %s667_s15, %s841_s15   ;;  %s612_s14 = sphi %s665_s14, %s840_s14   ;;  %s608_s13 = sphi %s663_s13, %s839_s13   ;;  %s604_s12 = sphi %s661_s12, %s838_s12  }
   0x8   : > { %s28_s22 = sadd.s32 1, %s624_s17  ;;  %s31_s23 = sadd.s32 1, %s628_s18 }
   0x9   : > { %p29_p0 = scmp.ge.s32.totalorder %s28_s22, 4  ;;  %s40_s24 = sadd.s32 1, %s612_s14 }
   0xa   : > { %p47_p1 = scmp.ne.s32.totalorder %s612_s14, %s608_s13  ;;  %p48_p2 = scmp.eq.s32.totalorder %s632_s19, 0 }
   0xb   : > { %s846_s22 = smov (%p29_p0, %s28_s22), 0  ;;  %s848_s23 = smov (!%p29_p0, %s31_s23), %s628_s18 }
   0xc   : > { %828 = sst [smem:[#allocation8_spill]] %s846_s22  ;;  %s36_s25 = ssub.s32 %s624_s17, %s846_s22 }
   0xd   : > { %p714_p3 = por %p48_p2, %p47_p1  ;;  %p33_p4 = scmp.ge.s32.totalorder %s848_s23, 2 }
   0xe   : > { %p53_p5 = scmp.ne.s32.totalorder %s608_s13, %s604_s12  ;;  %p54_p6 = scmp.eq.s32.totalorder %s389_s20, 0 }
   0xf   : > { %p121_p7 = scmp.eq.s32.totalorder %s389_s20, 7  ;;  %s850_s23 = smov (%p33_p4, %s848_s23), 0 }
  0x10   : > { %830 = sst [smem:[#allocation9_spill]] %s850_s23  ;;  %p722_p8 = por %p54_p6, %p53_p5 }
  0x11   : > { %p726_p9 = por %p121_p7, %p47_p1  ;;  %s35_s29 = ssub.s32 %s628_s18, %s850_s23 }
  0x12   : > { %p127_p10 = scmp.eq.s32.totalorder %s390_s21, 7  ;;  %s37_s30 = sor.u32 %s36_s25, %s35_s29 }
  0x13   : > { %p38_p11 = scmp.eq.s32.totalorder %s37_s30, 0  ;;  %p429_p13 = scmp.lt.s32.totalorder %s632_s19, 8 }
  0x14   : > { %p732_p12 = por %p127_p10, %p53_p5  ;;  %s153_s5 = sand.u32 1, %s612_s14  }
  0x15   : > { %s739_s6 = scalar_select %p38_p11, %s612_s14, %s40_s24  }
  0x16   : > { %s393_s7 = sshll.u32 %s153_s5, 4  ;;  %s394_s8 = sshll.u32 %s628_s18, 3 }
  0x17   : > { %834 = sst [smem:[#allocation10_spill]] %s739_s6  ;;  %s161_s9 = sadd.s32 %s624_s17, %s394_s8 }
  0x18   : > { %s157_s10 = scalar_lea.vmem [#allocation2], %s393_s7  ;;  %s395_s20 = sshll.u32 %s161_s9, 3 }
  0x19   : > { %s166_s11 = sshll.u32 %s157_s10, 4  ;;  %s163_s29 = scalar_lea.hbm %s822_s0, %s395_s20  ;;  %s167_s11 = int_to_ptr.vmem [resolvable:$true] %s166_s11 }
  0x1a   : > { %p422_p0 = pnand %p429_p13, %p714_p3  ;;  %s164_s30 = sshll.u32 %s163_s29, 4  ;;  %s165_s30 = int_to_ptr.hbm [resolvable:$true] %s164_s30 }
  0x1b   : > { %s154_s23 = scalar_lea.sflag [#allocation3], %s153_s5  ;;  %s634_s24 = smov 512  }
  0x1c   : > { %s635_s22 = smov 128   ;;  %s636_s6 = smov 8  }
  0x1d   : > { %424 = dma.hbm_to_vmem [thread:$0]  (!%p422_p0), %s165_s30, 256, %s167_s11, %s154_s23, %s634_s24, %s635_s22, %s636_s6  }
  0x1e   : > { %p396_p1 = scmp.ge.s32.totalorder %s632_s19, 1  ;;  %p174_p2 = scmp.lt.s32.totalorder %s632_s19, 9 }
  0x20   : > { %p175_p4 = pnand %p396_p1, %p174_p2 }
  0x21   : > { %s751_s7 = sand.u32 (!%p175_p4), 1, %s608_s13  }
  0x22   : > { %178 = sbr.rel (%p175_p4) target bundleno = 190 (0xbe), region = 32  ;;  %s397_s8 = sshll.u32 (!%p175_p4), %s751_s7, 4 }
  0x23   : > { %s181_s26 = scalar_lea.sflag (!%p175_p4), [#allocation3], %s751_s7  ;;  %s184_s9 = scalar_lea.vmem (!%p175_p4), [#allocation2], %s397_s8 }
  0x27   : > { %595 = dma.done.wait (%p722_p8), %s181_s26, 256  }
  0x28   : > { %597 = vsyncadd (%p722_p8), %s181_s26, 4294967040  ;;  %v637_v0 = vmov 0   ;;  %v209_v1 = vld [vmem:[%s184_s9] sm:$0xff]  ;;  %v210_v2 = vld [vmem:[%s184_s9 + $0x8] sm:$0xff]  ;;  %vm250_vm0 = vcmask 130048   ;;  %s410_s24 = sshll.u32 %s620_s16, 4 }
  0x29   : > { %503 = vset.pattern.permute.xlu1 %v637_v0  ;;  %502 = vset.pattern.permute.xlu0 %v637_v0  ;;  %v211_v3 = vpack.c.bf16 %v210_v2, %v209_v1  ;;  %v218_v4 = vld [vmem:[%s824_s2 + $0x10] sm:$0xff]  ;;  %v216_v5 = vld [vmem:[%s824_s2] sm:$0xff]  ;;  %v415_v7 = vld [vmem:[%s823_s1 + $0x8] sm:$0xff]  ;;  %s398_s8 = sshll.u32 %s751_s7, 5  ;;  %s295_s26 = sadd.s32 %s616_s15, %s410_s24 }
  0x2a   : > { %v414_v6 = vld [vmem:[%s823_s1] sm:$0xff]  ;;  %232 = vperm.xlu1 %503, %v218_v4   ;;  %222 = vperm.xlu0 %502, %v216_v5   ;;  %v219_v8 = vld [vmem:[%s824_s2 + $0x18] sm:$0xff]  ;;  %v217_v9 = vld [vmem:[%s824_s2 + $0x8] sm:$0xff]  ;;  %s411_s9 = sshll.u32 %s295_s26, 3  ;;  %s207_s22 = scalar_lea.vmem [#allocation5], %s398_s8 }
  0x2b   : > { %264 = vmatpush.bf16.msra.mxu0 %v211_v3  ;;  %416 = vmatpush.bf16.msra.mxu1 %v211_v3  ;;  %s297_s6 = scalar_lea.hbm %s825_s3, %s411_s9  ;;  %s298_s16 = sshll.u32 %s207_s22, 4  ;;  %s299_s16 = int_to_ptr.vmem [resolvable:$true] %s298_s16 }
  0x2c   : > { %s300_s15 = sshll.u32 %s297_s6, 4  ;;  %s285_s10 = scalar_lea.sflag [#allocation4], %s751_s7  ;;  %s301_s15 = int_to_ptr.hbm [resolvable:$true] %s300_s15 }
  0x2d   : > { %s548_s11 = sshra.s32 %s301_s15, 4  ;;  %s554_s25 = scalar_lea.hbm %s825_s3, 256  ;;  %s549_s11 = int_to_ptr.hbm [resolvable:$true] %s548_s11 }
  0x2e   : > { %407 = vmatmul.msk.bf16.vlgmr.msra.gmra.mxu0 %vm250_vm0, %v414_v6  ;;  %408 = vmatmul.msk.bf16.vlgmr.msra.gmra.mxu1 %vm250_vm0, %v415_v7  ;;  %s550_s27 = scalar_lea.hbm %s549_s11, 32  ;;  %p555_p7 = scmp.lt.s32.totalorder %s549_s11, %s825_s3 }
  0x2f   : > { %p551_p3 = scmp.ne.s32.totalorder %s549_s11, %s550_s27  ;;  %p556_p8 = scmp.lt.s32.totalorder %s554_s25, %s550_s27 }
  0x31   : > { %p552_p5 = pnand %p551_p3, %p726_p9  ;;  %p557_p10 = por %p556_p8, %p555_p7 }
  0x32   : > { %237 = vperm.xlu1 %503, %v219_v8   ;;  %227 = vperm.xlu0 %502, %v217_v9  }
  0x33   : > { %p553_p6 = pneg %p552_p5 }
  0x35   : > { %p558_p11 = pnand %p557_p10, %p553_p6 }
  0x9c   : > { %v233_v10 = vpop.permute.xlu1 %232  ;;  %v223_v11 = vpop.permute.xlu0 %222 }
  0xa4   : > { %v238_v18 = vpop.permute.xlu1 %237  ;;  %v228_v19 = vpop.permute.xlu0 %227 }
  0xab   : > { %v266_v12 = vpop.f32.mrf.mxu0  ;;  %v271_v13 = vpop.f32.mrf.mxu1 }
  0xac   : > { %v267_v14 = vadd.f32 %v266_v12, %v223_v11  ;;  %v272_v15 = vadd.f32 %v271_v13, %v233_v10 }
  0xae   : > { %v276_v16 = vmax.f32 %v267_v14, 0.0  ;;  %v278_v17 = vmax.f32 %v272_v15, 0.0 }
  0xb0   : > { %280 = vst [vmem:[%s207_s22] sm:$0xff] %v276_v16 }
  0xb1   : > { %282 = vst [vmem:[%s207_s22 + $0x10] sm:$0xff] %v278_v17 }
  0xb3   : > { %v268_v20 = vpop.f32.mrf.mxu0  ;;  %v273_v21 = vpop.f32.mrf.mxu1 }
  0xb4   : > { %v269_v22 = vadd.f32 %v268_v20, %v228_v19  ;;  %v274_v23 = vadd.f32 %v273_v21, %v238_v18 }
  0xb6   : > { %v277_v24 = vmax.f32 %v269_v22, 0.0  ;;  %v279_v25 = vmax.f32 %v274_v23, 0.0 }
  0xb8   : > { %281 = vst [vmem:[%s207_s22 + $0x8] sm:$0xff] %v277_v24 }
  0xb9   : > { %283 = vst [vmem:[%s207_s22 + $0x18] sm:$0xff] %v279_v25 }
  0xba   : > { %561 = shalt.err (!%p558_p11)
}
  0xbb   : > { %s638_s7 = smov 128   ;;  %s639_s24 = smov 512  }
  0xbc   : > { %s640_s8 = smov 8  }
  0xbd   : > { %419 = dma.vmem_to_hbm [thread:$0]  (%p726_p9), %s299_s16, 512, %s301_s15, %s285_s10, %s638_s7, %s639_s24, %s640_s8  }
  0xbe PF: > { %p430_p13 = scmp.ge.s32.totalorder %s632_s19, 2  ;;  %s315_s26 = sand.u32 1, %s604_s12  }
  0xbf   : > { %s316_s9 = scalar_lea.sflag [#allocation4], %s315_s26 }
  0xc0   : > { %p426_p0 = pnand %p430_p13, %p732_p12 }
  0xc2   : > { %p427_p1 = pneg %p426_p0 }
  0xc4   : > { %599 = dma.done.wait (%p427_p1), %s316_s9, 512  }
  0xc5   : > { %601 = vsyncadd (%p427_p1), %s316_s9, 4294966784  ;;  %s19_s19 = sadd.s32 1, %s632_s19   ;;  %s835_s22 = sld [smem:[#allocation10_spill]] }
  0xc6   : > { %p16_p2 = scmp.ge.s32.totalorder %s19_s19, 10   ;;  %s836_s28 = sld [smem:[#allocation8_spill]] }
  0xc7   : > { %s837_s23 = sld [smem:[#allocation9_spill]]  ;;  %s838_s12 = smov %s608_s13 }
  0xc8   : > { %s839_s13 = smov %s612_s14  ;;  %s841_s15 = smov %s624_s17 }
  0xc9   : > { %s842_s16 = smov %s628_s18  ;;  %18 = sbr.rel (!%p16_p2) target bundleno = 7 (0x7), region = 77 }
  0xcb   : > { %s840_s14 = smov %s835_s22 }
  0xcc   : > { %s843_s17 = smov %s836_s28 }
  0xcd   : > { %s844_s18 = smov %s837_s23 }
  0xce   :  { %322 = vsyncpa [#allocation3], 1 }
  0xcf   :  { %324 = vsyncpa [#allocation3 + $0x1], 1 }
  0xd0   :  { %325 = vsyncpa [#allocation4], 1 }
  0xd1   :  { %327 = vsyncpa [#allocation4 + $0x1], 1 }

</bundles_post_ra>
